<compile_context>
chip_gen: v5e
topology: v5e:2x2
jax: 0.10.0
libtpu: 0.0.40
codegen_flags: <defaults>
</compile_context>

<pallas_src>
import math

import jax
import jax.numpy as jnp
from jax.experimental import pallas as pl
from jax.experimental.pallas import tpu as pltpu


# -----------------------------------------------------------------------------
# Kernels
# -----------------------------------------------------------------------------
def _copy_kernel(x_ref, o_ref):
    # Major-axis reordering is fully expressed by the BlockSpec index maps;
    # the block itself is moved verbatim.
    o_ref[...] = x_ref[...]


def _swap_minors_kernel(x_ref, o_ref):
    # Supported transpose pattern: identity on leading (size-1) dims + swap of
    # the last two dims -> single XLU transpose of the minor plane.
    o_ref[...] = jnp.swapaxes(x_ref[...], -1, -2)


# -----------------------------------------------------------------------------
# One pallas_call realizing a grouped permutation whose last two grouped axes
# either stay in place (copy) or swap (minor transpose); the remaining (major)
# axes are reordered purely through the index maps.
# -----------------------------------------------------------------------------
def _permute_call(xg, gperm):
    squeeze = False
    if xg.ndim == 2:
        # Add a dummy leading major so the gridded path is used uniformly.
        xg = xg.reshape((1,) + xg.shape)
        gperm = (0,) + tuple(p + 1 for p in gperm)
        squeeze = True

    k = xg.ndim
    swap = gperm[-2:] == (k - 1, k - 2)
    out_gshape = tuple(xg.shape[a] for a in gperm)
    n_major = k - 2
    maj_perm = gperm[:n_major]            # output major j <- input major maj_perm[j]
    grid = out_gshape[:n_major]
    in_block = (1,) * n_major + xg.shape[-2:]
    out_block = (1,) * n_major + out_gshape[-2:]

    def in_index(*g):
        idx = [0] * k
        for j, a in enumerate(maj_perm):
            idx[a] = g[j]
        return tuple(idx)

    def out_index(*g):
        return tuple(g) + (0, 0)

    kernel = _swap_minors_kernel if swap else _copy_kernel

    y = pl.pallas_call(
        kernel,
        out_shape=jax.ShapeDtypeStruct(out_gshape, xg.dtype),
        grid_spec=pltpu.PrefetchScalarGridSpec(
            num_scalar_prefetch=0,
            grid=grid,
            in_specs=[pl.BlockSpec(in_block, in_index)],
            out_specs=pl.BlockSpec(out_block, out_index),
        ),
        compiler_params=pltpu.CompilerParams(
            dimension_semantics=("parallel",) * n_major),
    )(xg)

    if squeeze:
        y = y.reshape(y.shape[1:])
    return y


# -----------------------------------------------------------------------------
# Planner: can this permutation be done in ONE call?
# Merge maximal runs of input axes that stay contiguous & in order in the
# output; if the resulting grouped permutation only swaps (or keeps) the two
# minor-most groups, a single call suffices.
# -----------------------------------------------------------------------------
def _plan_single_call(perm, shape):
    n = len(perm)
    inv = [0] * n
    for out_pos, in_ax in enumerate(perm):
        inv[in_ax] = out_pos

    groups = [[0]]
    for a in range(1, n):
        if inv[a] == inv[a - 1] + 1:
            groups[-1].append(a)
        else:
            groups.append([a])

    def gperm_of(gs):
        return tuple(sorted(range(len(gs)), key=lambda i: inv[gs[i][0]]))

    gp = gperm_of(groups)
    k = len(groups)

    if k >= 2 and gp[-2:] == (k - 1, k - 2):
        pass  # single minor-swap call
    elif gp[-1] == k - 1 and len(groups[-1]) >= 2:
        # The trailing (lane-side) run is preserved; split it so both minor
        # groups stay in place -> pure copy with major reordering via BlockSpecs.
        groups = groups[:-1] + [groups[-1][:-1], [groups[-1][-1]]]
        gp = gperm_of(groups)
    else:
        return None

    gshape = tuple(int(math.prod(shape[a] for a in g)) for g in groups)
    return gshape, gp


# -----------------------------------------------------------------------------
# General fallback: move axes to the end one at a time; each move is one
# minor-swap call on a 3-D regrouped view (wrapper reshapes are free row-major
# merges/splits).  Rarely needed in practice.
# -----------------------------------------------------------------------------
def _move_axis_to_end(arr, pos):
    nd = arr.ndim
    if pos == nd - 1:
        return arr
    shape = arr.shape
    lead = int(math.prod(shape[:pos]))
    d = shape[pos]
    tail = int(math.prod(shape[pos + 1:]))
    y = _permute_call(arr.reshape(lead, d, tail), (0, 2, 1))
    return y.reshape(shape[:pos] + shape[pos + 1:] + (d,))


def _permute_general(x, perm):
    n = len(perm)
    j0 = 0
    while j0 < n and perm[j0] == j0:   # identity prefix never needs to move
        j0 += 1
    order = list(range(n))
    out = x
    for ax in perm[j0:]:
        pos = order.index(ax)
        out = _move_axis_to_end(out, pos)
        order.append(order.pop(pos))
    return out


# -----------------------------------------------------------------------------
# Public wrapper + module equivalent
# -----------------------------------------------------------------------------
def permute_pallas(x, permute_query):
    ndim = x.ndim
    perm = tuple(int(p) % ndim for p in permute_query)
    assert sorted(perm) == list(range(ndim)), "invalid permutation"
    if perm == tuple(range(ndim)):
        return x
    out_shape = tuple(x.shape[p] for p in perm)

    plan = _plan_single_call(perm, x.shape)
    if plan is not None:
        gshape, gperm = plan
        y = _permute_call(x.reshape(gshape), gperm)
        return y.reshape(out_shape)
    return _permute_general(x, perm)


class Permute:
    """Pallas-TPU equivalent of the PyTorch `Permute` module."""

    def __init__(self, permute_query):
        self.permute_query = tuple(permute_query)

    def __call__(self, x):
        return permute_pallas(x, self.permute_query)


# -----------------------------------------------------------------------------
# Demo / correctness check
# -----------------------------------------------------------------------------
if __name__ == "__main__":
    key = jax.random.PRNGKey(0)
    B, C, H, W = 2, 4, 16, 16
    x = jax.random.normal(key, (B, C, H, W), jnp.float32)

    perms_4d = [
        (0, 1, 2, 3),   # identity (view)
        (0, 2, 3, 1),   # NCHW -> NHWC   (single minor-swap call)
        (0, 3, 1, 2),   # NHWC -> NCHW   (single minor-swap call)
        (0, 1, 3, 2),   # transpose spatial dims (single minor-swap call)
        (1, 0, 2, 3),   # swap leading dims (single copy call, majors via index maps)
        (0, 2, 1, 3),   # general fallback path (chain of minor-swap calls)
    ]
    for perm in perms_4d:
        y = jax.block_until_ready(Permute(perm)(x))
        ref = jnp.transpose(x, perm)
        assert y.shape == ref.shape, perm
        assert bool(jnp.array_equal(y, ref)), perm

    # 2-D transpose through the same machinery
    key, k2 = jax.random.split(key)
    x2 = jax.random.normal(k2, (32, 48), jnp.float32)
    y2 = jax.block_until_ready(Permute((1, 0))(x2))
    assert bool(jnp.array_equal(y2, jnp.transpose(x2, (1, 0))))

    print("KERNEL_OK")
</pallas_src>

<mosaic_0001>
module attributes {stable_mosaic.version = 11 : i64} {
  func.func @_swap_minors_kernel(%arg0: i32, %arg1: memref<1x4x256xf32, #tpu.memory_space<vmem>>, %arg2: memref<1x256x4xf32, #tpu.memory_space<vmem>>) attributes {dimension_semantics = [#tpu.dimension_semantics<parallel>], iteration_bounds = array<i64: 2>, scalar_prefetch = 0 : i64, scratch_operands = 0 : i64, tpu.core_type = #tpu.core_type<tc>, window_params = [{transform_indices = @transform_0, window_bounds = array<i64: 1, 4, 256>}, {transform_indices = @transform_1, window_bounds = array<i64: 1, 256, 4>}]} {
    %c0 = arith.constant 0 : index
    %c0_0 = arith.constant 0 : index
    %c0_1 = arith.constant 0 : index
    %0 = vector.load %arg1[%c0, %c0_0, %c0_1] : memref<1x4x256xf32, #tpu.memory_space<vmem>>, vector<1x4x256xf32>
    %1 = tpu.transpose %0, [0, 2, 1] : vector<1x4x256xf32> -> vector<1x256x4xf32>
    %c0_2 = arith.constant 0 : index
    %c0_3 = arith.constant 0 : index
    %c0_4 = arith.constant 0 : index
    %2 = vector.load %arg2[%c0_2, %c0_3, %c0_4] : memref<1x256x4xf32, #tpu.memory_space<vmem>>, vector<1x256x4xf32>
    tpu.vector_store %arg2[%c0_2, %c0_3, %c0_4], %1 {strides = array<i32>} : memref<1x256x4xf32, #tpu.memory_space<vmem>>, vector<1x256x4xf32>,
    return
  }
  func.func @transform_0(%arg0: i32) -> (i32, i32, i32) {
    %c0_i32 = arith.constant 0 : i32
    %c0_i32_0 = arith.constant 0 : i32
    %c0_i32_1 = arith.constant 0 : i32
    return %arg0, %c0_i32, %c0_i32_0 : i32, i32, i32
  }
  func.func @transform_1(%arg0: i32) -> (i32, i32, i32) {
    %c0_i32 = arith.constant 0 : i32
    %c0_i32_0 = arith.constant 0 : i32
    %c0_i32_1 = arith.constant 0 : i32
    return %arg0, %c0_i32, %c0_i32_0 : i32, i32, i32
  }
}

</mosaic_0001>

<bundles_post_ra>
// kernel: tpu_custom_call.1
= control target key start
LH: loop header
LB: loop body
LE: loop exit
PB: predicated region body
PF: predicated region fallthrough
CT: control target
= control target key end

     0   :  { %6 = vsyncpa [#allocation3], 0  ;;  %s598_s0 = inlined_call_operand.hbm [shape: f32[2,4,256], index: 0, kind: input, shape index: {}]   ;;  %s599_s1 = inlined_call_operand.vmem [shape: f32[2,256,4], index: 1, kind: output, shape index: {}]  }
   0x1   :  { %8 = vsyncpa [#allocation3 + $0x1], 0  ;;  %s438_s6 = smov 0   ;;  %s440_s7 = smov 0  }
   0x2   :  { %s442_s8 = smov 0   ;;  %s444_s9 = smov 0  }
   0x3 LB: > { %s457_s10 = sadd.s32 4294967295, %s426_s9   ;;  %s460_s11 = sadd.s32 1, %s426_s9   ;;  %s426_s9 = sphi %s444_s9, %s606_s9   ;;  %s422_s8 = sphi %s442_s8, %s605_s8   ;;  %s418_s7 = sphi %s440_s7, %s604_s7   ;;  %s414_s6 = sphi %s438_s6, %s603_s6  }
   0x4   : > { %s18_s12 = ssub.s32 %s426_s9, %s460_s11  ;;  %s21_s13 = sadd.s32 1, %s422_s8 }
   0x5   : > { %p19_p0 = scmp.eq.s32.totalorder %s18_s12, 0  ;;  %p28_p1 = scmp.ne.s32.totalorder %s422_s8, %s418_s7 }
   0x6   : > { %p29_p2 = scmp.eq.s32.totalorder %s426_s9, 0  ;;  %p34_p3 = scmp.ne.s32.totalorder %s418_s7, %s414_s6 }
   0x7   : > { %s470_s14 = scalar_select %p19_p0, %s422_s8, %s21_s13  }
   0x8   : > { %p472_p4 = por %p29_p2, %p28_p1  ;;  %p35_p5 = scmp.eq.s32.totalorder %s457_s10, 0 }
   0x9   : > { %p328_p6 = scmp.lt.s32.totalorder %s426_s9, 2  ;;  %s84_s17 = sand.u32 1, %s422_s8  }
   0xa   : > { %p478_p7 = por %p35_p5, %p34_p3  ;;  %s311_s18 = sshll.u32 %s84_s17, 3 }
   0xb   : > { %s320_s19 = sshll.u32 %s426_s9, 3  ;;  %s88_s23 = scalar_lea.vmem [#allocation2], %s311_s18 }
   0xc   : > { %s93_s22 = scalar_lea.hbm %s598_s0, %s320_s19  ;;  %s97_s24 = sshll.u32 %s88_s23, 4  ;;  %s98_s24 = int_to_ptr.vmem [resolvable:$true] %s97_s24 }
   0xd   : > { %s95_s25 = sshll.u32 %s93_s22, 4  ;;  %p489_p8 = pnand %p328_p6, %p472_p4  ;;  %s96_s25 = int_to_ptr.hbm [resolvable:$true] %s95_s25 }
   0xe   : > { %p314_p9 = scmp.ge.s32.totalorder %s426_s9, 1  ;;  %p102_p10 = scmp.lt.s32.totalorder %s426_s9, 3 }
   0xf   : > { %s85_s27 = scalar_lea.sflag [#allocation3], %s84_s17  ;;  %s362_s28 = sshra.s32 %s96_s25, 4  ;;  %s363_s28 = int_to_ptr.hbm [resolvable:$true] %s362_s28 }
  0x10   : > { %s364_s29 = scalar_lea.hbm %s363_s28, 8  ;;  %p366_p12 = pneg %p489_p8 }
  0x11   : > { %p365_p11 = scmp.ne.s32.totalorder %s363_s28, %s364_s29  ;;  %s369_s3 = scalar_lea.hbm %s598_s0, 16 }
  0x12   : > { %p370_p1 = scmp.lt.s32.totalorder %s363_s28, %s598_s0  ;;  %p371_p2 = scmp.lt.s32.totalorder %s369_s3, %s364_s29 }
  0x13   : > { %p367_p13 = pnand %p366_p12, %p365_p11 }
  0x14   : > { %p372_p3 = por %p371_p2, %p370_p1 }
  0x15   : > { %p368_p0 = pneg %p367_p13 }
  0x17   : > { %p373_p4 = pnand %p372_p3, %p368_p0 }
  0x19   : > { %376 = shalt.err (!%p373_p4)
}
  0x1a   : > { %327 = dma.hbm_to_vmem [thread:$0]  (!%p489_p8), %s96_s25, 128, %s98_s24, %s85_s27  }
  0x1b   : > { %p103_p5 = pnand %p314_p9, %p102_p10 }
  0x1c   : > { %s108_s6 = sand.u32 (!%p103_p5), 1, %s418_s7  }
  0x1d   : > { %106 = sbr.rel (%p103_p5) target bundleno = 458 (0x1ca), region = 24  ;;  %s315_s12 = sshll.u32 (!%p103_p5), %s108_s6, 3 }
  0x1e   : > { %s109_s13 = scalar_lea.sflag (!%p103_p5), [#allocation3], %s108_s6  ;;  %s112_s15 = scalar_lea.vmem (!%p103_p5), [#allocation2], %s315_s12 }
  0x22   : > { %409 = dma.done.wait (%p478_p7), %s109_s13, 128  }
  0x23   : > { %411 = vsyncadd (%p478_p7), %s109_s13, 4294967168  ;;  %v137_v0 = vld [vmem:[%s112_s15] sm:$0xff]  ;;  %p132_p6 = scmp.lt.s32.totalorder %s457_s10, 1  ;;  %vm208_vm0 = vcmask 31744  }
  0x24   : > { %139 = vst [vmem:[#allocation1] ss:$2 sm:$0xff] %v137_v0 }
  0x25   : > { %s608_s10 = smov (!%p132_p6, %s457_s10), 1 }
  0x26   : > { %s321_s9 = sshll.u32 %s608_s10, 8 }
  0x27   : > { %s519_s19 = scalar_lea.vmem %s599_s1, %s321_s9 }
  0x2b   : > { %v140_v1 = vld.sshfl [vmem:[#allocation1] sm:$0xff pattern:$0x75316420]  ;;  %v141_v2 = vld.sshfl [vmem:[#allocation1 + $0x8] sm:$0xff pattern:$0x75316420] }
  0x2c   : > { %144 = vxpose.xlu0.b32.start.end [1/1] (short) %v140_v1, 128 }
  0xac   : > { %176 = vxpose.xlu0.b32.start.end [1/1] (short) %v141_v2, 128 }
  0xd0   : > { %v160_v3 = vpop.trf.xlu0 }
  0xd1   : > { %209 = vst.msk [vmem:[%s519_s19] sm:$0xff] %vm208_vm0, %v160_v3 }
  0xd8   : > { %v161_v4 = vpop.trf.xlu0 }
  0xd9   : > { %210 = vst.msk [vmem:[%s519_s19 + $0x8] sm:$0xff] %vm208_vm0, %v161_v4 }
  0xe0   : > { %v162_v5 = vpop.trf.xlu0 }
  0xe1   : > { %211 = vst.msk [vmem:[%s519_s19 + $0x10] sm:$0xff] %vm208_vm0, %v162_v5 }
  0xe8   : > { %v163_v6 = vpop.trf.xlu0 }
  0xe9   : > { %212 = vst.msk [vmem:[%s519_s19 + $0x18] sm:$0xff] %vm208_vm0, %v163_v6 }
  0xf0   : > { %v164_v7 = vpop.trf.xlu0 }
  0xf1   : > { %213 = vst.msk [vmem:[%s519_s19 + $0x20] sm:$0xff] %vm208_vm0, %v164_v7 }
  0xf8   : > { %v165_v8 = vpop.trf.xlu0 }
  0xf9   : > { %214 = vst.msk [vmem:[%s519_s19 + $0x28] sm:$0xff] %vm208_vm0, %v165_v8 }
 0x100   : > { %v166_v9 = vpop.trf.xlu0 }
 0x101   : > { %215 = vst.msk [vmem:[%s519_s19 + $0x30] sm:$0xff] %vm208_vm0, %v166_v9 }
 0x108   : > { %v167_v10 = vpop.trf.xlu0 }
 0x109   : > { %216 = vst.msk [vmem:[%s519_s19 + $0x38] sm:$0xff] %vm208_vm0, %v167_v10 }
 0x110   : > { %v168_v11 = vpop.trf.xlu0 }
 0x111   : > { %217 = vst.msk [vmem:[%s519_s19 + $0x40] sm:$0xff] %vm208_vm0, %v168_v11 }
 0x118   : > { %v169_v12 = vpop.trf.xlu0 }
 0x119   : > { %218 = vst.msk [vmem:[%s519_s19 + $0x48] sm:$0xff] %vm208_vm0, %v169_v12 }
 0x120   : > { %v170_v13 = vpop.trf.xlu0 }
 0x121   : > { %219 = vst.msk [vmem:[%s519_s19 + $0x50] sm:$0xff] %vm208_vm0, %v170_v13 }
 0x128   : > { %v171_v14 = vpop.trf.xlu0 }
 0x129   : > { %220 = vst.msk [vmem:[%s519_s19 + $0x58] sm:$0xff] %vm208_vm0, %v171_v14 }
 0x130   : > { %v172_v15 = vpop.trf.xlu0 }
 0x131   : > { %221 = vst.msk [vmem:[%s519_s19 + $0x60] sm:$0xff] %vm208_vm0, %v172_v15 }
 0x138   : > { %v173_v16 = vpop.trf.xlu0 }
 0x139   : > { %222 = vst.msk [vmem:[%s519_s19 + $0x68] sm:$0xff] %vm208_vm0, %v173_v16 }
 0x140   : > { %v174_v17 = vpop.trf.xlu0 }
 0x141   : > { %223 = vst.msk [vmem:[%s519_s19 + $0x70] sm:$0xff] %vm208_vm0, %v174_v17 }
 0x148   : > { %v175_v18 = vpop.trf.xlu0 }
 0x149   : > { %224 = vst.msk [vmem:[%s519_s19 + $0x78] sm:$0xff] %vm208_vm0, %v175_v18 }
 0x150   : > { %v192_v19 = vpop.trf.xlu0 }
 0x151   : > { %225 = vst.msk [vmem:[%s519_s19 + $0x80] sm:$0xff] %vm208_vm0, %v192_v19 }
 0x158   : > { %v193_v20 = vpop.trf.xlu0 }
 0x159   : > { %226 = vst.msk [vmem:[%s519_s19 + $0x88] sm:$0xff] %vm208_vm0, %v193_v20 }
 0x160   : > { %v194_v21 = vpop.trf.xlu0 }
 0x161   : > { %227 = vst.msk [vmem:[%s519_s19 + $0x90] sm:$0xff] %vm208_vm0, %v194_v21 }
 0x168   : > { %v195_v22 = vpop.trf.xlu0 }
 0x169   : > { %228 = vst.msk [vmem:[%s519_s19 + $0x98] sm:$0xff] %vm208_vm0, %v195_v22 }
 0x170   : > { %v196_v23 = vpop.trf.xlu0 }
 0x171   : > { %229 = vst.msk [vmem:[%s519_s19 + $0xa0] sm:$0xff] %vm208_vm0, %v196_v23 }
 0x178   : > { %v197_v24 = vpop.trf.xlu0 }
 0x179   : > { %230 = vst.msk [vmem:[%s519_s19 + $0xa8] sm:$0xff] %vm208_vm0, %v197_v24 }
 0x180   : > { %v198_v25 = vpop.trf.xlu0 }
 0x181   : > { %231 = vst.msk [vmem:[%s519_s19 + $0xb0] sm:$0xff] %vm208_vm0, %v198_v25 }
 0x188   : > { %v199_v26 = vpop.trf.xlu0 }
 0x189   : > { %232 = vst.msk [vmem:[%s519_s19 + $0xb8] sm:$0xff] %vm208_vm0, %v199_v26 }
 0x190   : > { %v200_v27 = vpop.trf.xlu0 }
 0x191   : > { %233 = vst.msk [vmem:[%s519_s19 + $0xc0] sm:$0xff] %vm208_vm0, %v200_v27 }
 0x198   : > { %v201_v28 = vpop.trf.xlu0 }
 0x199   : > { %234 = vst.msk [vmem:[%s519_s19 + $0xc8] sm:$0xff] %vm208_vm0, %v201_v28 }
 0x1a0   : > { %v202_v29 = vpop.trf.xlu0 }
 0x1a1   : > { %235 = vst.msk [vmem:[%s519_s19 + $0xd0] sm:$0xff] %vm208_vm0, %v202_v29 }
 0x1a8   : > { %v203_v30 = vpop.trf.xlu0 }
 0x1a9   : > { %236 = vst.msk [vmem:[%s519_s19 + $0xd8] sm:$0xff] %vm208_vm0, %v203_v30 }
 0x1b0   : > { %v204_v31 = vpop.trf.xlu0 }
 0x1b1   : > { %237 = vst.msk [vmem:[%s519_s19 + $0xe0] sm:$0xff] %vm208_vm0, %v204_v31 }
 0x1b8   : > { %v205_v32 = vpop.trf.xlu0 }
 0x1b9   : > { %238 = vst.msk [vmem:[%s519_s19 + $0xe8] sm:$0xff] %vm208_vm0, %v205_v32 }
 0x1c0   : > { %v206_v33 = vpop.trf.xlu0 }
 0x1c1   : > { %239 = vst.msk [vmem:[%s519_s19 + $0xf0] sm:$0xff] %vm208_vm0, %v206_v33 }
 0x1c8   : > { %v207_v34 = vpop.trf.xlu0 }
 0x1c9   : > { %240 = vst.msk [vmem:[%s519_s19 + $0xf8] sm:$0xff] %vm208_vm0, %v207_v34 }
 0x1ca PF: > { %p11_p7 = scmp.ge.s32.totalorder %s460_s11, 4   ;;  %s603_s6 = smov %s418_s7 }
 0x1cb   : > { %s604_s7 = smov %s422_s8  ;;  %s605_s8 = smov %s470_s14 }
 0x1cc   : > { %s606_s9 = smov %s460_s11  ;;  %13 = sbr.rel (!%p11_p7) target bundleno = 3 (0x3), region = 64 }
 0x1d1   :  { %262 = vsyncpa [#allocation3], 1 }
 0x1d2   :  { %264 = vsyncpa [#allocation3 + $0x1], 1 }

</bundles_post_ra>
